<compile_context>
chip_gen: v6e
topology: v6e:2x2x1
jax: 0.10.0
libtpu: 0.0.40
codegen_flags: <defaults>
</compile_context>

<pallas_src>
import functools
import math

import jax
import jax.numpy as jnp
from jax.experimental import pallas as pl
from jax.experimental.pallas import tpu as pltpu


# ---------------------------------------------------------------------------
# helpers
# ---------------------------------------------------------------------------

def _pick_tile(s, target):
    """Largest divisor of s that is <= target and a multiple of 16 (else s)."""
    if s <= target:
        return s
    for t in range(target, 15, -1):
        if s % t == 0 and t % 16 == 0:
            return t
    return s


def _device_kind():
    try:
        return jax.devices()[0].device_kind.lower()
    except Exception:
        return ""


def _physical_vmem_bytes():
    try:
        return int(pltpu.get_tpu_info().vmem_capacity_bytes)
    except Exception:
        return 64 * 1024 * 1024          # assume the smallest (v7x per-TC)


def _spec(shape, index_map, *, single_buffer=False):
    """BlockSpec; optionally single-buffered (constant-index blocks do not
    benefit from the second pipeline buffer)."""
    if single_buffer:
        try:
            return pl.BlockSpec(shape, index_map, pipeline_mode=pl.Buffered(1))
        except Exception:                # pipeline_mode unavailable -> default
            pass
    return pl.BlockSpec(shape, index_map)


# ---------------------------------------------------------------------------
# pass 1: K/V projection (once per element -- hoisted out of the kv loop)
# ---------------------------------------------------------------------------

def _kv_proj_kernel(x_ref, wkv_ref, k_ref, v_ref):
    xb = x_ref[0].astype(jnp.bfloat16)                           # (TS, C)
    kv = jnp.dot(xb, wkv_ref[...],
                 preferred_element_type=jnp.float32)             # (TS, 2C) f32
    c = k_ref.shape[-1]
    k_ref[0] = kv[:, :c].astype(jnp.bfloat16)
    v_ref[0] = kv[:, c:].astype(jnp.bfloat16)


def _kv_projection(x_seq, wkv_bf16, *, ts):
    n, s, c = x_seq.shape
    kv_flops = 2 * n * s * c * (2 * c)
    kv_bytes = n * s * c * x_seq.dtype.itemsize + 2 * n * s * c * 2 + 2 * c * c * 2
    return pl.pallas_call(
        _kv_proj_kernel,
        out_shape=(jax.ShapeDtypeStruct((n, s, c), jnp.bfloat16),
                   jax.ShapeDtypeStruct((n, s, c), jnp.bfloat16)),
        grid_spec=pltpu.PrefetchScalarGridSpec(
            num_scalar_prefetch=0,
            grid=(n, s // ts),
            in_specs=[pl.BlockSpec((1, ts, c), lambda b, si: (b, si, 0)),
                      _spec((c, 2 * c), lambda b, si: (0, 0),
                            single_buffer=(c >= 256))],
            out_specs=[pl.BlockSpec((1, ts, c), lambda b, si: (b, si, 0)),
                       pl.BlockSpec((1, ts, c), lambda b, si: (b, si, 0))],
        ),
        compiler_params=pltpu.CompilerParams(
            dimension_semantics=("parallel", "parallel")),
        cost_estimate=pl.CostEstimate(flops=kv_flops, transcendentals=0,
                                      bytes_accessed=kv_bytes),
    )(x_seq, wkv_bf16)


# ---------------------------------------------------------------------------
# pass 2: flash attention + output projection + residual
# ---------------------------------------------------------------------------

def _flash_attn_kernel(xq_ref, k_ref, v_ref, wq_ref, bq_ref, wo_ref, bo_ref,
                       o_ref, q_scr, m_scr, l_scr, acc_scr, *, tk, exp_bf16):
    """Grid = (batch, q_tile, kv_tile).  Blocks:
       xq_ref : (1, TQ, C) f32  query-tile slab of x (also the residual)
       k_ref  : (1, TK, C) or VMEM-resident (1, S, C), bf16 (no bias; cancels)
       v_ref  : same shapes as k_ref, bf16 (bias folded into bo)
       wq     : (C, C) bf16 pre-scaled by 1/sqrt(C); bq (1, C) f32 pre-scaled
       wo     : (C, C) bf16; bo (1, C) f32 = bv @ wo + bo
       o_ref  : (1, TQ, C)
    """
    ki = pl.program_id(2)
    nk = pl.num_programs(2)

    @pl.when(ki == 0)
    def _init():
        # Q projection once per query tile (scale already folded into wq/bq).
        q = jnp.dot(xq_ref[0].astype(jnp.bfloat16), wq_ref[...],
                    preferred_element_type=jnp.float32) + bq_ref[...]
        q_scr[...] = q.astype(jnp.bfloat16)
        m_scr[...] = jnp.full_like(m_scr, -jnp.inf)
        l_scr[...] = jnp.zeros_like(l_scr)
        acc_scr[...] = jnp.zeros_like(acc_scr)

    # Current K/V tile: either a streamed (TK, C) block, or a slice of the
    # VMEM-resident (S, C) slab (fetched once per batch).
    if k_ref.shape[1] == tk:
        k = k_ref[0]
        v = v_ref[0]
    else:
        start = pl.multiple_of(ki * tk, tk)
        k = k_ref[0, pl.ds(start, tk), :]
        v = v_ref[0, pl.ds(start, tk), :]

    # scores = q @ k^T  (contraction on both last dims -> transposed-RHS MXU
    # matmul, no k transpose copy)
    scores = jax.lax.dot_general(q_scr[...], k, (((1,), (1,)), ((), ())),
                                 preferred_element_type=jnp.float32)  # (TQ, TK)

    # online softmax update
    m_prev = m_scr[...]
    m_new = jnp.maximum(m_prev, jnp.max(scores, axis=-1, keepdims=True))
    alpha = jnp.exp(m_prev - m_new)
    shifted = scores - m_new
    if exp_bf16:
        # v6e/v7x: bf16 EUP path; p is already bf16 for the PV matmul.
        p = jnp.exp(shifted.astype(jnp.bfloat16))
        p_sum = jnp.sum(p, axis=-1, keepdims=True, dtype=jnp.float32)
        pv = jnp.dot(p, v, preferred_element_type=jnp.float32)
    else:
        # v5e: VPU/EUP have no bf16 path; keep elementwise math in f32.
        p = jnp.exp(shifted)
        p_sum = jnp.sum(p, axis=-1, keepdims=True)
        pv = jnp.dot(p.astype(jnp.bfloat16), v, preferred_element_type=jnp.float32)
    l_scr[...] = alpha * l_scr[...] + p_sum
    acc_scr[...] = alpha * acc_scr[...] + pv
    m_scr[...] = m_new

    @pl.when(ki == nk - 1)
    def _finalize():
        attn = acc_scr[...] * pl.reciprocal(l_scr[...], approx=True)  # (TQ, C)
        out = jnp.dot(attn.astype(jnp.bfloat16), wo_ref[...],
                      preferred_element_type=jnp.float32) + bo_ref[...]
        # residual add in f32 against the original query slab
        o_ref[0] = (out + xq_ref[0].astype(jnp.float32)).astype(o_ref.dtype)


def vae_attention_block(x, params, *, tq=None, tk=None, kv_resident=None):
    """Pallas implementation of VAE_AttentionBlock.forward (self-attention over
    the flattened spatial axis + residual; GroupNorm exists in __init__ but is
    never invoked in the provided forward())."""
    n, c, h, w = x.shape
    s = h * w
    tq = _pick_tile(s, 1024) if tq is None else tq
    tk = _pick_tile(s, 1024) if tk is None else tk
    assert s % tq == 0 and s % tk == 0, "tile sizes must divide H*W"

    scale = 1.0 / math.sqrt(c)                        # n_heads = 1 -> d_head = C
    wq = (params["wq"] * scale).astype(jnp.bfloat16)
    bq = (params["bq"] * scale).astype(jnp.float32)
    # K bias cancels in softmax; V bias folds into the output bias because the
    # attention weights sum to 1:  out = A@(x@wv)@wo + (bv@wo + bo).
    wkv = jnp.concatenate([params["wk"], params["wv"]], axis=1).astype(jnp.bfloat16)
    wo = params["wo"].astype(jnp.bfloat16)
    bo = (params["bv"] @ params["wo"] + params["bo"]).astype(jnp.float32)

    # NCHW -> (N, S, C); residual/Q input stays f32 for accuracy.
    x_seq = jnp.transpose(x.reshape(n, c, s), (0, 2, 1))

    # ---- pass 1: project K/V once per element (bf16) ----------------------
    k_all, v_all = _kv_projection(x_seq, wkv, ts=_pick_tile(s, 1024))

    # ---- pass 2: flash attention ------------------------------------------
    if kv_resident is None:
        kv_resident = (2 * s * c * 2) <= 16 * 1024 * 1024     # K+V bf16 slabs

    grid = (n, s // tq, s // tk)
    xq_spec = pl.BlockSpec((1, tq, c), lambda b, qi, ki: (b, qi, 0))
    if kv_resident:
        kv_single = (s * c * 2) >= (2 * 1024 * 1024)          # worth single-buffering
        k_spec = _spec((1, s, c), lambda b, qi, ki: (b, 0, 0), single_buffer=kv_single)
        v_spec = _spec((1, s, c), lambda b, qi, ki: (b, 0, 0), single_buffer=kv_single)
        kv_buf_bytes = 2 * s * c * 2 * (1 if kv_single else 2)
    else:
        k_spec = pl.BlockSpec((1, tk, c), lambda b, qi, ki: (b, ki, 0))
        v_spec = pl.BlockSpec((1, tk, c), lambda b, qi, ki: (b, ki, 0))
        kv_buf_bytes = 2 * tk * c * 2 * 2
    single_w = c >= 256
    wq_spec = _spec((c, c), lambda b, qi, ki: (0, 0), single_buffer=single_w)
    bq_spec = pl.BlockSpec((1, c), lambda b, qi, ki: (0, 0))
    wo_spec = _spec((c, c), lambda b, qi, ki: (0, 0), single_buffer=single_w)
    bo_spec = pl.BlockSpec((1, c), lambda b, qi, ki: (0, 0))
    out_spec = pl.BlockSpec((1, tq, c), lambda b, qi, ki: (b, qi, 0))

    exp_bf16 = any(g in _device_kind() for g in ("v6", "v7", "7x"))
    kernel = functools.partial(_flash_attn_kernel, tk=tk, exp_bf16=exp_bf16)

    # Generation-aware VMEM budget: working set + headroom, capped well below
    # the local chip's physical VMEM (don't request all of v7x's 64 MiB).
    x_bytes = x.dtype.itemsize
    est = (kv_buf_bytes
           + 2 * tq * c * x_bytes * 2                 # xq + out blocks (x2 buffers)
           + 2 * c * c * 2 + 2 * c * 4                # weights + biases
           + tq * c * 2 + tq * c * 4 + 8 * tq         # q/acc/m/l scratch
           + 5 * tq * tk * 4)                         # scores/exp temporaries
    phys = _physical_vmem_bytes()
    vmem_limit = int(min(max(est + 8 * 1024 * 1024, 32 * 1024 * 1024),
                         max(phys - 16 * 1024 * 1024, phys // 2)))

    flops = n * (4 * s * s * c + 4 * s * c * c)
    transcend = n * s * s + n * (s // tk) * s
    kv_read = n * 2 * s * c * 2 * (1 if kv_resident else (s // tq))
    cost = pl.CostEstimate(flops=flops, transcendentals=transcend,
                           bytes_accessed=n * s * c * x_bytes * 2 + kv_read
                           + 2 * c * c * 2)

    out_seq = pl.pallas_call(
        kernel,
        out_shape=jax.ShapeDtypeStruct((n, s, c), x.dtype),
        grid_spec=pltpu.PrefetchScalarGridSpec(
            num_scalar_prefetch=0,
            grid=grid,
            in_specs=[xq_spec, k_spec, v_spec, wq_spec, bq_spec, wo_spec, bo_spec],
            out_specs=out_spec,
            scratch_shapes=[
                pltpu.VMEM((tq, c), jnp.bfloat16),    # cached Q tile
                pltpu.VMEM((tq, 1), jnp.float32),     # running max
                pltpu.VMEM((tq, 1), jnp.float32),     # running sum
                pltpu.VMEM((tq, c), jnp.float32),     # output accumulator
            ],
        ),
        compiler_params=pltpu.CompilerParams(
            # batch + query-tile axes shard across TensorCores; kv axis is the
            # online-softmax reduction.
            dimension_semantics=("parallel", "parallel", "arbitrary"),
            vmem_limit_bytes=vmem_limit,
        ),
        cost_estimate=cost,
    )(x_seq, k_all, v_all, wq, bq, wo, bo)

    return jnp.transpose(out_seq, (0, 2, 1)).reshape(n, c, h, w)


# ---------------------------------------------------------------------------
# parameter init + pure-JAX reference
# ---------------------------------------------------------------------------

def init_params(key, channs):
    """Deterministic init matching the module's parameter shapes.
    in_proj: Linear(C, 3C) split into wq/wk/wv of shape (C, C) (pre-transposed
    so the math is x @ W).  out_proj: Linear(C, C).  GroupNorm(32, C) params
    exist in the torch module but are unused in the provided forward()."""
    keys = jax.random.split(key, 8)
    lim = 1.0 / math.sqrt(channs)
    u = lambda k, shp: jax.random.uniform(k, shp, jnp.float32, -lim, lim)
    return {
        "wq": u(keys[0], (channs, channs)),
        "wk": u(keys[1], (channs, channs)),
        "wv": u(keys[2], (channs, channs)),
        "wo": u(keys[3], (channs, channs)),
        "bq": u(keys[4], (1, channs)),
        "bk": u(keys[5], (1, channs)),
        "bv": u(keys[6], (1, channs)),
        "bo": u(keys[7], (1, channs)),
        # groupnorm gamma/beta: present in the torch module, never applied in forward
        "gn_gamma": jnp.ones((channs,), jnp.float32),
        "gn_beta": jnp.zeros((channs,), jnp.float32),
    }


def reference(x, p):
    """Pure-JAX reference of the torch forward (attention + residual)."""
    n, c, h, w = x.shape
    xs = jnp.transpose(x.reshape(n, c, h * w), (0, 2, 1))        # (N, S, C)
    q = xs @ p["wq"] + p["bq"]
    k = xs @ p["wk"] + p["bk"]
    v = xs @ p["wv"] + p["bv"]
    scores = jnp.einsum("nsc,ntc->nst", q, k) / math.sqrt(c)
    a = jax.nn.softmax(scores, axis=-1)
    o = jnp.einsum("nst,ntc->nsc", a, v)
    o = o @ p["wo"] + p["bo"]
    o = o + xs
    return jnp.transpose(o, (0, 2, 1)).reshape(n, c, h, w)


if __name__ == "__main__":
    # channs kept compatible with GroupNorm(32, channs) in the torch module
    N, C, H, W = 2, 32, 8, 8
    key = jax.random.PRNGKey(0)
    kx, kp = jax.random.split(key)
    x = jax.random.normal(kx, (N, C, H, W), jnp.float32)
    params = init_params(kp, C)
    ref = reference(x, params)

    # 1) multi-step flash path with VMEM-resident K/V (grid = (2, 2, 2))
    out_resident = jax.block_until_ready(
        vae_attention_block(x, params, tq=32, tk=32))
    # 2) same tiling but streamed K/V tiles (large-S fallback path)
    out_streamed = jax.block_until_ready(
        vae_attention_block(x, params, tq=32, tk=32, kv_resident=False))
    # 3) default tile selection (single kv step per query tile)
    out_default = jax.block_until_ready(vae_attention_block(x, params))

    for out in (out_resident, out_streamed, out_default):
        assert out.shape == (N, C, H, W)
        # bf16 MXU operands + approx reciprocal -> loosened tolerance
        max_err = float(jnp.max(jnp.abs(out - ref)))
        assert max_err < 5e-2, f"mismatch vs reference: {max_err}"

    print("KERNEL_OK")
</pallas_src>

<mosaic_0001>
module attributes {stable_mosaic.version = 11 : i64} {
  func.func @_kv_proj_kernel(%arg0: i32, %arg1: i32, %arg2: memref<1x64x32xf32, #tpu.memory_space<vmem>>, %arg3: memref<32x64xbf16, #tpu.memory_space<vmem>>, %arg4: memref<1x64x32xbf16, #tpu.memory_space<vmem>>, %arg5: memref<1x64x32xbf16, #tpu.memory_space<vmem>>) attributes {dimension_semantics = [#tpu.dimension_semantics<parallel>, #tpu.dimension_semantics<parallel>], iteration_bounds = array<i64: 2, 1>, scalar_prefetch = 0 : i64, scratch_operands = 0 : i64, tpu.core_type = #tpu.core_type<tc>, window_params = [{transform_indices = @transform_0, window_bounds = array<i64: 1, 64, 32>}, {pipeline_mode = #tpu.pipeline_mode<synchronous>, transform_indices = @transform_1, window_bounds = array<i64: 32, 64>}, {transform_indices = @transform_2, window_bounds = array<i64: 1, 64, 32>}, {transform_indices = @transform_3, window_bounds = array<i64: 1, 64, 32>}]} {
    %c0 = arith.constant 0 : index
    %c0_0 = arith.constant 0 : index
    %c0_1 = arith.constant 0 : index
    %0 = vector.load %arg2[%c0, %c0_0, %c0_1] : memref<1x64x32xf32, #tpu.memory_space<vmem>>, vector<1x64x32xf32>
    %1 = vector.shape_cast %0 : vector<1x64x32xf32> to vector<64x32xf32>
    %2 = arith.truncf %1 : vector<64x32xf32> to vector<64x32xbf16>
    %c0_2 = arith.constant 0 : index
    %c0_3 = arith.constant 0 : index
    %3 = vector.load %arg3[%c0_2, %c0_3] : memref<32x64xbf16, #tpu.memory_space<vmem>>, vector<32x64xbf16>
    %cst = arith.constant dense<0.000000e+00> : vector<64x64xf32>
    %4 = tpu.matmul %2, %3, %cst {dimension_numbers = #tpu.dot_dimension_numbers<[1], [0], [0], [1], [0, 0, 1, 1], [], []>} : vector<64x32xbf16>, vector<32x64xbf16>, vector<64x64xf32> -> vector<64x64xf32>
    %5 = vector.extract_strided_slice %4 {offsets = [0, 0], sizes = [64, 32], strides = [1, 1]} : vector<64x64xf32> to vector<64x32xf32>
    %6 = arith.truncf %5 : vector<64x32xf32> to vector<64x32xbf16>
    %c0_4 = arith.constant 0 : index
    %c0_5 = arith.constant 0 : index
    %c0_6 = arith.constant 0 : index
    %7 = vector.load %arg4[%c0_4, %c0_5, %c0_6] : memref<1x64x32xbf16, #tpu.memory_space<vmem>>, vector<1x64x32xbf16>
    %8 = vector.shape_cast %7 : vector<1x64x32xbf16> to vector<64x32xbf16>
    %9 = vector.shape_cast %6 : vector<64x32xbf16> to vector<1x64x32xbf16>
    tpu.vector_store %arg4[%c0_4, %c0_5, %c0_6], %9 {strides = array<i32>} : memref<1x64x32xbf16, #tpu.memory_space<vmem>>, vector<1x64x32xbf16>,
    %10 = vector.extract_strided_slice %4 {offsets = [0, 32], sizes = [64, 32], strides = [1, 1]} : vector<64x64xf32> to vector<64x32xf32>
    %11 = arith.truncf %10 : vector<64x32xf32> to vector<64x32xbf16>
    %c0_7 = arith.constant 0 : index
    %c0_8 = arith.constant 0 : index
    %c0_9 = arith.constant 0 : index
    %12 = vector.load %arg5[%c0_7, %c0_8, %c0_9] : memref<1x64x32xbf16, #tpu.memory_space<vmem>>, vector<1x64x32xbf16>
    %13 = vector.shape_cast %12 : vector<1x64x32xbf16> to vector<64x32xbf16>
    %14 = vector.shape_cast %11 : vector<64x32xbf16> to vector<1x64x32xbf16>
    tpu.vector_store %arg5[%c0_7, %c0_8, %c0_9], %14 {strides = array<i32>} : memref<1x64x32xbf16, #tpu.memory_space<vmem>>, vector<1x64x32xbf16>,
    return
  }
  func.func @transform_0(%arg0: i32, %arg1: i32) -> (i32, i32, i32) {
    %c0_i32 = arith.constant 0 : i32
    %c0_i32_0 = arith.constant 0 : i32
    return %arg0, %arg1, %c0_i32 : i32, i32, i32
  }
  func.func @transform_1(%arg0: i32, %arg1: i32) -> (i32, i32) {
    %c0_i32 = arith.constant 0 : i32
    %c0_i32_0 = arith.constant 0 : i32
    %c0_i32_1 = arith.constant 0 : i32
    return %c0_i32, %c0_i32_0 : i32, i32
  }
  func.func @transform_2(%arg0: i32, %arg1: i32) -> (i32, i32, i32) {
    %c0_i32 = arith.constant 0 : i32
    %c0_i32_0 = arith.constant 0 : i32
    return %arg0, %arg1, %c0_i32 : i32, i32, i32
  }
  func.func @transform_3(%arg0: i32, %arg1: i32) -> (i32, i32, i32) {
    %c0_i32 = arith.constant 0 : i32
    %c0_i32_0 = arith.constant 0 : i32
    return %arg0, %arg1, %c0_i32 : i32, i32, i32
  }
}

</mosaic_0001>

<bundles_post_ra>
// kernel: tpu_custom_call.1
= control target key start
LH: loop header
LB: loop body
LE: loop exit
PB: predicated region body
PF: predicated region fallthrough
CT: control target
= control target key end

     0   :  { %s683_s12 = smov 0   ;;  %s685_s13 = smov 0   ;;  %s763_s0 = inlined_call_operand.vmem [shape: f32[2,64,32], index: 0, kind: input, shape index: {}]   ;;  %s764_s1 = inlined_call_operand.vmem [shape: bf16[32,64], index: 1, kind: input, shape index: {}]   ;;  %s765_s2 = inlined_call_operand.vmem [shape: bf16[2,64,32], index: 2, kind: output, shape index: {0}]   ;;  %s766_s3 = inlined_call_operand.vmem [shape: bf16[2,64,32], index: 3, kind: output, shape index: {1}]  }
   0x1   :  { %s687_s14 = smov 0  }
   0x2 LB: > { %s26_s15 = sadd.s32 1, %s656_s13  ;;  %p555_p0 = scmp.ge.s32.totalorder %s660_s14, 1  ;;  %s660_s14 = sphi %s687_s14, %s14_s14   ;;  %s656_s13 = sphi %s685_s13, %s768_s13   ;;  %s652_s12 = sphi %s683_s12, %s767_s12  }
   0x3   : > { %p28_p1 = scmp.ge.s32.totalorder %s26_s15, 2  ;;  %p163_p2 = scmp.lt.s32.totalorder %s660_s14, 3 }
   0x5   : > { %s770_s15 = smov (%p28_p1, %s26_s15), 0  ;;  %p164_p3 = pnand %p555_p0, %p163_p2 }
   0x6   : > { %p205_p4 = scmp.lt.s32.totalorder (!%p164_p3), %s652_s12, 1  ;;  %s662_s28 = smov (!%p164_p3), 96  }
   0x7   : > { %167 = sbr.rel (%p164_p3) target bundleno = 346 (0x15a), region = 28 }
   0xc   : > { %v636_v0 = vld [vmem:[%s764_s1 + $0x8] sm:$0xff]   ;;  %v637_v1 = vld [vmem:[%s764_s1] sm:$0xff]   ;;  %s772_s12 = smov (!%p205_p4, %s652_s12), 1  ;;  %vm263_vm0 = vcmask 261120   ;;  %vm373_vm1 = vcmask 257024  }
   0xd   : > { %595 = vmatprep.subr.bf16.mxu0 %v636_v0  ;;  %607 = vmatprep.subr.bf16.mxu1 %v636_v0  ;;  %s578_s20 = sshll.u32 %s772_s12, 6  ;;  %s579_s24 = sshll.u32 %s772_s12, 5 }
   0xe   : > { %596 = vmatpush3.bf16.msra.mxu0 %v636_v0  ;;  %609 = vmatpush3.bf16.msra.mxu1 %v636_v0  ;;  %s212_s23 = scalar_lea.vmem %s763_s0, %s578_s20  ;;  %s723_s27 = scalar_lea.vmem %s765_s2, %s579_s24 }
   0xf   : > { %597 = vmatprep.subr.bf16.mxu0 %v637_v1  ;;  %608 = vmatprep.subr.bf16.mxu1 %v637_v1  ;;  %v235_v2 = vld [vmem:[%s212_s23] sm:$0xff]  ;;  %v236_v3 = vld [vmem:[%s212_s23 + $0x8] sm:$0xff]  ;;  %v237_v7 = vld [vmem:[%s212_s23 + $0x10] sm:$0xff]  ;;  %s232_s4 = scalar_lea.vmem %s766_s3, %s579_s24 }
  0x10   : > { %v239_v4 = vld [vmem:[%s212_s23 + $0x20] sm:$0xff]  ;;  %v243_v5 = vpack.c.bf16 %v236_v3, %v235_v2  ;;  %v240_v6 = vld [vmem:[%s212_s23 + $0x28] sm:$0xff]  ;;  %v238_v8 = vld [vmem:[%s212_s23 + $0x18] sm:$0xff] }
  0x11   : > { %v245_v9 = vpack.c.bf16 %v240_v6, %v239_v4  ;;  %v244_v10 = vpack.c.bf16 %v238_v8, %v237_v7  ;;  %v241_v11 = vld [vmem:[%s212_s23 + $0x30] sm:$0xff]  ;;  %v242_v12 = vld [vmem:[%s212_s23 + $0x38] sm:$0xff] }
  0x12   : > { %598 = vmatpush3.bf16.msra.mxu0 %v637_v1  ;;  %610 = vmatpush3.bf16.msra.mxu1 %v637_v1  ;;  %v246_v13 = vpack.c.bf16 %v242_v12, %v241_v11 }
  0x13   : > { %599 = vmatprep.mubr.msk.bf16.mxu0 %vm263_vm0, %v243_v5  ;;  %603 = vmatprep.mubr.msk.bf16.mxu1 %vm263_vm0, %v245_v9 }
  0x15   : > { %600 = vmatmul.mubr.msk.bf16.vlgmr.msra.gmra.mxu0 %vm263_vm0, %v244_v10  ;;  %604 = vmatmul.mubr.msk.bf16.vlgmr.msra.gmra.mxu1 %vm263_vm0, %v246_v13 }
  0xd5   : > { %v601_v14 = vpop.f32.mrf.mxu0  ;;  %v605_v16 = vpop.f32.mrf.mxu1 }
  0xd6   : > { %v583_v15 = vpack.c.bf16 %v601_v14, %v601_v14  ;;  %v587_v17 = vpack.c.bf16 %v605_v16, %v605_v16 }
  0xd7   : > { %v310_v18 = vpop.f32.mrf.mxu0  ;;  %v326_v20 = vpop.f32.mrf.mxu1 }
  0xd8   : > { %376 = vst.msk [vmem:[%s723_s27 + $0x8] sm:$0xf] %vm373_vm1, %v583_v15  ;;  %v581_v19 = vpack.c.bf16 %v310_v18, %v310_v18  ;;  %386 = vrot.lane.b32.xlu1 %v583_v15, %s662_s28  ;;  %380 = vst.msk [vmem:[%s723_s27 + $0x18] sm:$0xf] %vm373_vm1, %v587_v17  ;;  %v585_v21 = vpack.c.bf16 %v326_v20, %v326_v20 }
  0xd9   : > { %v602_v22 = vpop.f32.mrf.mxu0  ;;  %v606_v24 = vpop.f32.mrf.mxu1 }
  0xda   : > { %374 = vst.msk [vmem:[%s723_s27] sm:$0xf] %vm373_vm1, %v581_v19  ;;  %v584_v23 = vpack.c.bf16 %v602_v22, %v602_v22  ;;  %382 = vrot.lane.b32.xlu0 %v581_v19, %s662_s28  ;;  %378 = vst.msk [vmem:[%s723_s27 + $0x10] sm:$0xf] %vm373_vm1, %v585_v21  ;;  %v588_v25 = vpack.c.bf16 %v606_v24, %v606_v24 }
  0xdb   : > { %v313_v26 = vpop.f32.mrf.mxu0  ;;  %v329_v28 = vpop.f32.mrf.mxu1 }
  0xdc   : > { %377 = vst.msk [vmem:[%s723_s27 + $0xc] sm:$0xf] %vm373_vm1, %v584_v23  ;;  %v582_v27 = vpack.c.bf16 %v313_v26, %v313_v26  ;;  %388 = vrot.lane.b32.xlu1 %v584_v23, %s662_s28  ;;  %381 = vst.msk [vmem:[%s723_s27 + $0x1c] sm:$0xf] %vm373_vm1, %v588_v25  ;;  %v586_v29 = vpack.c.bf16 %v329_v28, %v329_v28 }
  0xde   : > { %375 = vst.msk [vmem:[%s723_s27 + $0x4] sm:$0xf] %vm373_vm1, %v582_v27  ;;  %390 = vrot.lane.b32.xlu0 %v585_v21, %s662_s28  ;;  %379 = vst.msk [vmem:[%s723_s27 + $0x14] sm:$0xf] %vm373_vm1, %v586_v29 }
  0xe0   : > { %392 = vrot.lane.b32.xlu1 %v586_v29, %s662_s28 }
  0xe2   : > { %384 = vrot.lane.b32.xlu0 %v582_v27, %s662_s28 }
  0xe4   : > { %396 = vrot.lane.b32.xlu1 %v588_v25, %s662_s28 }
  0xe6   : > { %394 = vrot.lane.b32.xlu0 %v587_v17, %s662_s28 }
 0x14a   : > { %v387_v30 = vpop.permute.xlu1 %386 }
 0x14b   : > { %408 = vst.msk [vmem:[%s232_s4 + $0x8] sm:$0xf] %vm373_vm1, %v387_v30 }
 0x14c   : > { %v383_v31 = vpop.permute.xlu0 %382 }
 0x14d   : > { %406 = vst.msk [vmem:[%s232_s4] sm:$0xf] %vm373_vm1, %v383_v31 }
 0x14e   : > { %v389_v32 = vpop.permute.xlu1 %388 }
 0x14f   : > { %409 = vst.msk [vmem:[%s232_s4 + $0xc] sm:$0xf] %vm373_vm1, %v389_v32 }
 0x150   : > { %v391_v33 = vpop.permute.xlu0 %390 }
 0x151   : > { %410 = vst.msk [vmem:[%s232_s4 + $0x10] sm:$0xf] %vm373_vm1, %v391_v33 }
 0x152   : > { %v393_v34 = vpop.permute.xlu1 %392 }
 0x153   : > { %411 = vst.msk [vmem:[%s232_s4 + $0x14] sm:$0xf] %vm373_vm1, %v393_v34 }
 0x154   : > { %v385_v35 = vpop.permute.xlu0 %384 }
 0x155   : > { %407 = vst.msk [vmem:[%s232_s4 + $0x4] sm:$0xf] %vm373_vm1, %v385_v35 }
 0x156   : > { %v397_v36 = vpop.permute.xlu1 %396 }
 0x157   : > { %413 = vst.msk [vmem:[%s232_s4 + $0x1c] sm:$0xf] %vm373_vm1, %v397_v36 }
 0x158   : > { %v395_v37 = vpop.permute.xlu0 %394 }
 0x159   : > { %412 = vst.msk [vmem:[%s232_s4 + $0x18] sm:$0xf] %vm373_vm1, %v395_v37 }
 0x15a PF: > { %s14_s14 = sadd.s32 1, %s660_s14   ;;  %s767_s12 = smov %s656_s13 }
 0x15b   : > { %p11_p5 = scmp.ge.s32.totalorder %s14_s14, 4   ;;  %s768_s13 = smov %s770_s15 }
 0x15d   :  { %13 = sbr.rel (!%p11_p5) target bundleno = 2 (0x2), region = 70 }

</bundles_post_ra>
